<compile_context>
chip_gen: v6e
topology: v6e:2x2x1
jax: 0.10.0
libtpu: 0.0.40
codegen_flags: <defaults>
</compile_context>

<pallas_src>
import functools

import jax
import jax.numpy as jnp
from jax.experimental import pallas as pl
from jax.experimental.pallas import tpu as pltpu


def _ce_kernel(logits_ref, labels_ref, out_ref, *, ignore_index, num_cols):
    """One (batch, spatial-tile) step.

    logits_ref: (1, C, TS)   logits, classes on sublanes, positions on lanes
    labels_ref: (1, 1, TS)   int32 labels
    out_ref:    (1, 1, 1, 128) per-tile lane-partial loss sums (f32)
    """
    j = pl.program_id(1)

    logits = logits_ref[0].astype(jnp.float32)           # (C, TS)
    labels = labels_ref[0]                                # (1, TS) int32
    c, ts = logits.shape

    # Numerically stable log-sum-exp over the (small) class axis -> sublane
    # reductions, cheap.
    m = jnp.max(logits, axis=0, keepdims=True)            # (1, TS)
    lse = jnp.log(jnp.sum(jnp.exp(logits - m), axis=0, keepdims=True)) + m

    # Gather logit at the label index via compare+select (no cast, no mul).
    cls_idx = jax.lax.broadcasted_iota(jnp.int32, (c, ts), 0)
    picked = jnp.sum(jnp.where(cls_idx == labels, logits, 0.0),
                     axis=0, keepdims=True)                # (1, TS)

    # Mask ignored labels and the ragged tail of the last spatial tile
    # (OOB block contents are unspecified, so they MUST be masked here).
    col = j * ts + jax.lax.broadcasted_iota(jnp.int32, (1, ts), 1)
    valid = (labels != ignore_index) & (col < num_cols)    # (1, TS) bool
    loss = jnp.where(valid, lse - picked, 0.0)             # (1, TS)

    # Fold lanes into a (1, 128) partial with lane-aligned static slices
    # (no cross-step scalar dependency, no full cross-lane reduce).
    partial = loss[:, 0:128]
    for k in range(1, ts // 128):
        partial = partial + loss[:, k * 128:(k + 1) * 128]
    out_ref[...] = partial.reshape(1, 1, 1, 128)


def cross_entropy_loss(cls_score, label, *, loss_weight=1.0,
                       ignore_index=-100, tile_cols=4096):
    """Pallas implementation of CrossEntropyLoss().forward(cls_score, label).

    cls_score: (N, C, H, W) float logits (NCHW, PyTorch layout). May be bf16.
    label:     (N, H, W) integer class labels (ignore_index marks ignored).
    Returns a scalar float32 loss (reduction='mean', weight=None,
    avg_factor=None, class_weight=None).
    """
    n, c, h, w = cls_score.shape
    s = h * w

    # Free reshapes: merge trailing contiguous dims, no transpose / pad.
    logits = cls_score.reshape(n, c, s)                       # (N, C, S)
    labels = label.reshape(n, 1, s).astype(jnp.int32)         # (N, 1, S)

    # Spatial tile: multiple of 128 lanes, clamped to the (rounded-up) extent.
    ts = min(int(tile_cols), pl.cdiv(s, 128) * 128)
    ts = pl.cdiv(ts, 128) * 128
    n_s_tiles = pl.cdiv(s, ts)

    # VMEM budget: 2x double-buffered input blocks + output + headroom,
    # kept well under v7x's 64 MiB physical VMEM for sane tile sizes.
    block_bytes = (c * ts * jnp.dtype(cls_score.dtype).itemsize  # logits tile
                   + ts * 4                                       # labels tile
                   + 512)                                         # out tile
    vmem_limit = min(96 << 20, max(16 << 20, 4 * block_bytes))

    kernel = functools.partial(_ce_kernel, ignore_index=int(ignore_index),
                               num_cols=s)

    partials = pl.pallas_call(
        kernel,
        out_shape=jax.ShapeDtypeStruct((n, n_s_tiles, 1, 128), jnp.float32),
        grid_spec=pltpu.PrefetchScalarGridSpec(
            num_scalar_prefetch=0,
            grid=(n, n_s_tiles),
            in_specs=[
                pl.BlockSpec((1, c, ts), lambda b, j: (b, 0, j)),
                pl.BlockSpec((1, 1, ts), lambda b, j: (b, 0, j)),
            ],
            out_specs=pl.BlockSpec((1, 1, 1, 128), lambda b, j: (b, j, 0, 0)),
        ),
        compiler_params=pltpu.CompilerParams(
            dimension_semantics=("parallel", "parallel"),
            vmem_limit_bytes=int(vmem_limit)),
    )(logits, labels)

    # Mean over the *original* element count (ignored pixels count in the
    # denominator, matching torch's reduction='none' + .mean() path here).
    scale = float(loss_weight) / float(n * s)
    return (jnp.sum(partials) * scale).astype(jnp.float32)


def _reference_loss(cls_score, label, *, loss_weight=1.0, ignore_index=-100):
    """Pure-JAX reference mirroring torch F.cross_entropy + mean reduction."""
    n, c, h, w = cls_score.shape
    logits = jnp.transpose(cls_score, (0, 2, 3, 1)).reshape(-1, c)
    logits = logits.astype(jnp.float32)
    labels = label.reshape(-1)
    lse = jax.scipy.special.logsumexp(logits, axis=-1)
    safe = jnp.clip(labels, 0, c - 1)
    picked = jnp.take_along_axis(logits, safe[:, None], axis=-1)[:, 0]
    per = lse - picked
    per = jnp.where(labels == ignore_index, 0.0, per)
    return loss_weight * jnp.mean(per)


if __name__ == "__main__":
    key = jax.random.PRNGKey(0)
    k1, k2, k3, k4, k5 = jax.random.split(key, 5)

    # ---- case 1: standard small shape, f32 logits, some ignored pixels ----
    N, C, H, W = 2, 4, 16, 16
    cls_score = jax.random.normal(k1, (N, C, H, W), dtype=jnp.float32)
    label = jax.random.randint(k2, (N, H, W), 0, C, dtype=jnp.int32)
    ignore_mask = jax.random.bernoulli(k3, 0.1, (N, H, W))
    label = jnp.where(ignore_mask, -100, label)

    loss = jax.block_until_ready(cross_entropy_loss(cls_score, label))
    ref = _reference_loss(cls_score, label)
    assert jnp.allclose(loss, ref, atol=1e-5, rtol=1e-5), (loss, ref)

    # ---- case 2: bf16 logits DMA'd as bf16 (upcast happens in-kernel) ----
    cls_bf16 = cls_score.astype(jnp.bfloat16)
    loss_bf16 = jax.block_until_ready(cross_entropy_loss(cls_bf16, label))
    ref_bf16 = _reference_loss(cls_bf16.astype(jnp.float32), label)
    assert jnp.allclose(loss_bf16, ref_bf16, atol=1e-4, rtol=1e-4), (
        loss_bf16, ref_bf16)

    # ---- case 3: ragged spatial extent + multiple tiles (masking path) ----
    H2, W2 = 17, 17  # S = 289, not a multiple of 128
    cls2 = jax.random.normal(k4, (N, C, H2, W2), dtype=jnp.float32)
    lbl2 = jax.random.randint(k5, (N, H2, W2), 0, C, dtype=jnp.int32)
    lbl2 = jnp.where(jax.random.bernoulli(k3, 0.1, (N, H2, W2)), -100, lbl2)
    loss2 = jax.block_until_ready(
        cross_entropy_loss(cls2, lbl2, tile_cols=128))  # forces ragged tiles
    ref2 = _reference_loss(cls2, lbl2)
    assert jnp.allclose(loss2, ref2, atol=1e-5, rtol=1e-5), (loss2, ref2)

    # TODO(synk): use_sigmoid / use_mask branches (binary_cross_entropy,
    # mask_cross_entropy), class_weight, avg_factor and reduction_override
    # are not exercised by the default module config and are not implemented.
    print("KERNEL_OK")
</pallas_src>

<mosaic_0001>
module attributes {stable_mosaic.version = 11 : i64} {
  func.func @_ce_kernel(%arg0: i32, %arg1: i32, %arg2: memref<1x4x256xf32, #tpu.memory_space<vmem>>, %arg3: memref<1x1x256xi32, #tpu.memory_space<vmem>>, %arg4: memref<1x1x1x128xf32, #tpu.memory_space<vmem>>) attributes {dimension_semantics = [#tpu.dimension_semantics<parallel>, #tpu.dimension_semantics<parallel>], iteration_bounds = array<i64: 2, 1>, scalar_prefetch = 0 : i64, scratch_operands = 0 : i64, tpu.core_type = #tpu.core_type<tc>, window_params = [{transform_indices = @transform_0, window_bounds = array<i64: 1, 4, 256>}, {transform_indices = @transform_1, window_bounds = array<i64: 1, 1, 256>}, {transform_indices = @transform_2, window_bounds = array<i64: 1, 1, 1, 128>}]} {
    %c0 = arith.constant 0 : index
    %c0_0 = arith.constant 0 : index
    %c0_1 = arith.constant 0 : index
    %0 = vector.load %arg2[%c0, %c0_0, %c0_1] : memref<1x4x256xf32, #tpu.memory_space<vmem>>, vector<1x4x256xf32>
    %1 = vector.shape_cast %0 : vector<1x4x256xf32> to vector<4x256xf32>
    %c0_2 = arith.constant 0 : index
    %c0_3 = arith.constant 0 : index
    %c0_4 = arith.constant 0 : index
    %2 = vector.load %arg3[%c0_2, %c0_3, %c0_4] : memref<1x1x256xi32, #tpu.memory_space<vmem>>, vector<1x1x256xi32>
    %3 = vector.shape_cast %2 : vector<1x1x256xi32> to vector<1x256xi32>
    %cst = arith.constant dense<0xFF800000> : vector<256xf32>
    %4 = vector.multi_reduction <maximumf>, %1, %cst [0] : vector<4x256xf32> to vector<256xf32>
    %5 = vector.shape_cast %4 : vector<256xf32> to vector<1x256xf32>
    %6 = vector.broadcast %5 : vector<1x256xf32> to vector<4x256xf32>
    %7 = arith.subf %1, %6 : vector<4x256xf32>
    %8 = math.exp %7 : vector<4x256xf32>
    %cst_5 = arith.constant dense<0.000000e+00> : vector<256xf32>
    %9 = vector.multi_reduction <add>, %8, %cst_5 [0] : vector<4x256xf32> to vector<256xf32>
    %10 = vector.shape_cast %9 : vector<256xf32> to vector<1x256xf32>
    %11 = math.log %10 : vector<1x256xf32>
    %12 = arith.addf %11, %5 : vector<1x256xf32>
    %13 = tpu.iota {dimensions = array<i32: 0>} : vector<4x256xi32>
    %14 = vector.broadcast %3 : vector<1x256xi32> to vector<4x256xi32>
    %15 = arith.cmpi eq, %13, %14 : vector<4x256xi32>
    %cst_6 = arith.constant 0.000000e+00 : f32
    %16 = vector.broadcast %cst_6 : f32 to vector<4x256xf32>
    %17 = arith.select %15, %1, %16 : vector<4x256xi1>, vector<4x256xf32>
    %cst_7 = arith.constant dense<0.000000e+00> : vector<256xf32>
    %18 = vector.multi_reduction <add>, %17, %cst_7 [0] : vector<4x256xf32> to vector<256xf32>
    %19 = vector.shape_cast %18 : vector<256xf32> to vector<1x256xf32>
    %c256_i32 = arith.constant 256 : i32
    %20 = arith.muli %arg1, %c256_i32 : i32
    %21 = tpu.iota {dimensions = array<i32: 1>} : vector<1x256xi32>
    %22 = vector.broadcast %20 : i32 to vector<1x256xi32>
    %23 = arith.addi %22, %21 : vector<1x256xi32>
    %c-100_i32 = arith.constant -100 : i32
    %24 = vector.broadcast %c-100_i32 : i32 to vector<1x256xi32>
    %25 = arith.cmpi ne, %3, %24 : vector<1x256xi32>
    %c256_i32_8 = arith.constant 256 : i32
    %26 = vector.broadcast %c256_i32_8 : i32 to vector<1x256xi32>
    %27 = arith.cmpi slt, %23, %26 : vector<1x256xi32>
    %28 = arith.andi %25, %27 : vector<1x256xi1>
    %29 = arith.subf %12, %19 : vector<1x256xf32>
    %cst_9 = arith.constant 0.000000e+00 : f32
    %30 = vector.broadcast %cst_9 : f32 to vector<1x256xf32>
    %31 = arith.select %28, %29, %30 : vector<1x256xi1>, vector<1x256xf32>
    %32 = vector.extract_strided_slice %31 {offsets = [0, 0], sizes = [1, 128], strides = [1, 1]} : vector<1x256xf32> to vector<1x128xf32>
    %33 = vector.extract_strided_slice %31 {offsets = [0, 128], sizes = [1, 128], strides = [1, 1]} : vector<1x256xf32> to vector<1x128xf32>
    %34 = arith.addf %32, %33 : vector<1x128xf32>
    %35 = vector.shape_cast %34 : vector<1x128xf32> to vector<1x1x1x128xf32>
    %c0_10 = arith.constant 0 : index
    %c0_11 = arith.constant 0 : index
    %c0_12 = arith.constant 0 : index
    %c0_13 = arith.constant 0 : index
    %36 = vector.load %arg4[%c0_10, %c0_11, %c0_12, %c0_13] : memref<1x1x1x128xf32, #tpu.memory_space<vmem>>, vector<1x1x1x128xf32>
    tpu.vector_store %arg4[%c0_10, %c0_11, %c0_12, %c0_13], %35 {strides = array<i32>} : memref<1x1x1x128xf32, #tpu.memory_space<vmem>>, vector<1x1x1x128xf32>,
    return
  }
  func.func @transform_0(%arg0: i32, %arg1: i32) -> (i32, i32, i32) {
    %c0_i32 = arith.constant 0 : i32
    %c0_i32_0 = arith.constant 0 : i32
    return %arg0, %c0_i32, %arg1 : i32, i32, i32
  }
  func.func @transform_1(%arg0: i32, %arg1: i32) -> (i32, i32, i32) {
    %c0_i32 = arith.constant 0 : i32
    %c0_i32_0 = arith.constant 0 : i32
    return %arg0, %c0_i32, %arg1 : i32, i32, i32
  }
  func.func @transform_2(%arg0: i32, %arg1: i32) -> (i32, i32, i32, i32) {
    %c0_i32 = arith.constant 0 : i32
    %c0_i32_0 = arith.constant 0 : i32
    %c0_i32_1 = arith.constant 0 : i32
    return %arg0, %arg1, %c0_i32, %c0_i32_0 : i32, i32, i32, i32
  }
}

</mosaic_0001>

<bundles_post_ra>
// kernel: tpu_custom_call.1
= control target key start
LH: loop header
LB: loop body
LE: loop exit
PB: predicated region body
PF: predicated region fallthrough
CT: control target
= control target key end

     0   :  { %7 = vsyncpa [#allocation3], 0  ;;  %s899_s0 = inlined_call_operand.hbm [shape: f32[2,4,256], index: 0, kind: input, shape index: {}]   ;;  %s900_s1 = inlined_call_operand.hbm [shape: s32[2,1,256], index: 1, kind: input, shape index: {}]   ;;  %s901_s2 = inlined_call_operand.hbm [shape: f32[2,1,1,128], index: 2, kind: output, shape index: {}]  }
   0x1   :  { %9 = vsyncpa [#allocation3 + $0x1], 0 }
   0x2   :  { %10 = vsyncpa [#allocation6], 0 }
   0x3   :  { %12 = vsyncpa [#allocation6 + $0x1], 0 }
   0x4   :  { %13 = vsyncpa [#allocation4], 0 }
   0x5   :  { %15 = vsyncpa [#allocation4 + $0x1], 0  ;;  %s728_s9 = smov 0   ;;  %s730_s10 = smov 0  }
   0x6   :  { %s732_s11 = smov 0   ;;  %s734_s12 = smov 0  }
   0x7   :  { %s736_s13 = smov 0   ;;  %s738_s14 = smov 0  }
   0x8 LB: > { %s472_s15 = sadd.s32 4294967295, %s706_s14   ;;  %s473_s16 = sadd.s32 4294967294, %s706_s14   ;;  %s706_s14 = sphi %s738_s14, %s21_s14   ;;  %s702_s13 = sphi %s736_s13, %s913_s13   ;;  %s698_s12 = sphi %s734_s12, %s912_s12   ;;  %s694_s11 = sphi %s732_s11, %s911_s11   ;;  %s690_s10 = sphi %s730_s10, %s910_s10   ;;  %s686_s9 = sphi %s728_s9, %s909_s9  }
   0x9   : > { %s33_s17 = sadd.s32 1, %s702_s13  ;;  %s42_s18 = sadd.s32 1, %s694_s11 }
   0xa   : > { %p35_p0 = scmp.ge.s32.totalorder %s33_s17, 2  ;;  %p49_p1 = scmp.ne.s32.totalorder %s694_s11, %s690_s10 }
   0xb   : > { %p50_p2 = scmp.eq.s32.totalorder %s706_s14, 0  ;;  %p55_p3 = scmp.ne.s32.totalorder %s690_s10, %s686_s9 }
   0xc   : > { %s915_s17 = smov (%p35_p0, %s33_s17), 0  ;;  %p56_p5 = scmp.eq.s32.totalorder %s472_s15, 0 }
   0xd   : > { %p769_p4 = por %p50_p2, %p49_p1  ;;  %s37_s20 = ssub.s32 %s702_s13, %s915_s17 }
   0xe   : > { %p109_p6 = scmp.eq.s32.totalorder %s472_s15, 1  ;;  %p40_p7 = scmp.eq.s32.totalorder %s37_s20, 0 }
   0xf   : > { %p775_p8 = por %p56_p5, %p55_p3  ;;  %p115_p10 = scmp.eq.s32.totalorder %s473_s16, 1 }
  0x10   : > { %p779_p9 = por %p109_p6, %p49_p1  ;;  %p507_p13 = scmp.lt.s32.totalorder %s706_s14, 2 }
  0x11   : > { %s784_s23 = scalar_select %p40_p7, %s694_s11, %s42_s18  }
  0x12   : > { %p786_p11 = por %p115_p10, %p55_p3  ;;  %s793_s25 = sand.u32 1, %s694_s11  }
  0x13   : > { %s476_s26 = sshll.u32 %s793_s25, 3  ;;  %s488_s27 = sshll.u32 %s702_s13, 7 }
  0x14   : > { %s147_s30 = scalar_lea.hbm %s899_s0, %s488_s27  ;;  %s139_s3 = scalar_lea.vmem [#allocation2], %s476_s26 }
  0x15   : > { %s149_s4 = sshll.u32 %s139_s3, 4  ;;  %p802_p0 = pnand %p507_p13, %p769_p4  ;;  %s150_s4 = int_to_ptr.vmem [resolvable:$true] %s149_s4 }
  0x16   : > { %p482_p1 = scmp.ge.s32.totalorder %s706_s14, 1  ;;  %p175_p2 = scmp.lt.s32.totalorder %s706_s14, 3 }
  0x17   : > { %s136_s6 = scalar_lea.sflag [#allocation3], %s793_s25  ;;  %p568_p3 = pneg %p802_p0 }
  0x18   : > { %s579_s7 = scalar_lea.vmem %s150_s4, 128  ;;  %s708_s8 = smov [#allocation2]  }
  0x19   : > { %p580_p5 = scmp.ne.s32.totalorder %s150_s4, %s579_s7  ;;  %s584_s15 = sshll.u32 %s708_s8, 4  ;;  %s585_s15 = int_to_ptr.vmem [resolvable:$false] %s584_s15 }
  0x1a   : > { %s586_s16 = scalar_lea.vmem %s585_s15, 256  ;;  %p587_p4 = scmp.lt.s32.totalorder %s150_s4, %s585_s15 }
  0x1b   : > { %p582_p6 = pnand %p580_p5, %p568_p3  ;;  %p588_p10 = scmp.lt.s32.totalorder %s586_s16, %s579_s7 }
  0x1d   : > { %p583_p7 = pneg %p582_p6  ;;  %p589_p13 = por %p588_p10, %p587_p4 }
  0x1f   : > { %p590_p12 = pnand %p589_p13, %p583_p7 }
  0x21   : > { %593 = shalt.err (!%p590_p12)
}
  0x22   : > { %499 = dma.hbm_to_vmem [thread:$0]  (!%p802_p0), %s147_s30, 128, %s150_s4, %s136_s6  }
  0x23   : > { %p820_p5 = pnand %p482_p1, %p175_p2  ;;  %s479_s19 = sshll.u32 %s793_s25, 1 }
  0x24   : > { %s489_s20 = sshll.u32 %s702_s13, 5  ;;  %s160_s29 = scalar_lea.vmem [#allocation5], %s479_s19 }
  0x25   : > { %s168_s28 = scalar_lea.hbm %s900_s1, %s489_s20  ;;  %s170_s3 = sshll.u32 %s160_s29, 4  ;;  %s171_s3 = int_to_ptr.vmem [resolvable:$true] %s170_s3 }
  0x26   : > { %s157_s7 = scalar_lea.sflag [#allocation6], %s793_s25  ;;  %s607_s8 = scalar_lea.vmem %s171_s3, 32 }
  0x27   : > { %p608_p12 = scmp.ne.s32.totalorder %s171_s3, %s607_s8  ;;  %s709_s30 = smov [#allocation5]  }
  0x28   : > { %s612_s4 = sshll.u32 %s709_s30, 4  ;;  %s613_s4 = int_to_ptr.vmem [resolvable:$false] %s612_s4 }
  0x29   : > { %p610_p6 = pnand %p608_p12, %p568_p3  ;;  %s614_s6 = scalar_lea.vmem %s613_s4, 64 }
  0x2a   : > { %p615_p1 = scmp.lt.s32.totalorder %s171_s3, %s613_s4  ;;  %p616_p2 = scmp.lt.s32.totalorder %s614_s6, %s607_s8 }
  0x2b   : > { %p611_p7 = pneg %p610_p6 }
  0x2c   : > { %p617_p4 = por %p616_p2, %p615_p1 }
  0x2e   : > { %p618_p10 = pnand %p617_p4, %p611_p7 }
  0x30   : > { %621 = shalt.err (!%p618_p10)
}
  0x31   : > { %502 = dma.hbm_to_vmem [thread:$0]  (!%p802_p0), %s168_s28, 32, %s171_s3, %s157_s7  }
  0x32   : > { %179 = sbr.rel (%p820_p5) target bundleno = 154 (0x9a), region = 28  ;;  %s838_s25 = sand.u32 (!%p820_p5), 1, %s690_s10  }
  0x33   : > { %s483_s15 = sshll.u32 (!%p820_p5), %s838_s25, 3  ;;  %s182_s16 = scalar_lea.sflag (!%p820_p5), [#allocation3], %s838_s25 }
  0x34   : > { %s185_s19 = scalar_lea.vmem (!%p820_p5), [#allocation2], %s483_s15 }
  0x37   : > { %673 = dma.done.wait (%p775_p8), %s182_s16, 128  }
  0x38   : > { %675 = vsyncadd (%p775_p8), %s182_s16, 4294967168  ;;  %s484_s5 = sshll.u32 %s838_s25, 1  ;;  %s191_s18 = scalar_lea.sflag [#allocation6], %s838_s25 }
  0x39   : > { %s194_s20 = scalar_lea.vmem [#allocation5], %s484_s5 }
  0x3a   : > { %677 = dma.done.wait (%p775_p8), %s191_s18, 32  }
  0x3b   : > { %679 = vsyncadd (%p775_p8), %s191_s18, 4294967264  ;;  %vm226_vm0 = vcmask 1043456   ;;  %v221_v0 = vld [vmem:[%s185_s19] sm:$0xff]  ;;  %v271_v18 = vlaneseq  ;;  %v222_v22 = vld [vmem:[%s194_s20] sm:$0x3]  ;;  %v711_v58 = vmov 1  }
  0x3c   : > { %v224_v1 = vcombine.high %v221_v0, %v221_v0  ;;  %v227_v2 = vsel %vm226_vm0, %v221_v0, -inf  ;;  %v710_v51 = vmov 1966171168   ;;  %v311_v59 = vcombine.low %v711_v58, %v711_v58  ;;  %s218_s21 = scalar_lea.vmem [#allocation7], %s838_s25  ;;  %s485_s27 = sshll.u32 %s698_s12, 4 }
  0x3d   : > { %v228_v3 = vrot.slane %v227_v2, 4  ;;  %v272_v20 = vshrl.u32 %v271_v18, 7  ;;  %v313_v52 = vunpack.c.l.s4 %v710_v51  ;;  %vm306_vm3 = vcmp.ne.s32.totalorder %v222_v22, 4294967196  ;;  %s368_s26 = sshll.u32 %s218_s21, 4  ;;  %s366_s3 = scalar_lea.hbm %s901_s2, %s485_s27  ;;  %s369_s26 = int_to_ptr.vmem [resolvable:$true] %s368_s26 }
  0x3e   : > { %v234_v4 = vsel %vm226_vm0, %v224_v1, -inf  ;;  %s355_s7 = scalar_lea.sflag [#allocation4], %s838_s25  ;;  %s622_s8 = scalar_lea.vmem %s369_s26, 16 }
  0x3f   : > { %v229_v5 = vmax.f32 %v227_v2, %v228_v3  ;;  %v235_v6 = vrot.slane %v234_v4, 4  ;;  %v275_v21 = vsub.s32 0, %v272_v20  ;;  %v279_v23 = vsub.s32 1, %v272_v20  ;;  %p623_p8 = scmp.ne.s32.totalorder %s369_s26, %s622_s8  ;;  %s712_s30 = smov [#allocation7]  }
  0x40   : > { %v314_v55 = vunpack.c.0.s8 %v313_v52  ;;  %s626_s4 = sshll.u32 %s712_s30, 4  ;;  %s627_s4 = int_to_ptr.vmem [resolvable:$false] %s626_s4 }
  0x41   : > { %v230_v7 = vrot.slane %v229_v5, 2  ;;  %v236_v8 = vmax.f32 %v234_v4, %v235_v6  ;;  %v276_v24 = vrot.slane %v222_v22, %v275_v21  ;;  %v280_v25 = vrot.slane %v222_v22, %v279_v23  ;;  %p624_p0 = pnand %p623_p8, %p779_p9  ;;  %s628_s6 = scalar_lea.vmem %s627_s4, 32 }
  0x42   : > { %v317_v60 = vsub.s32 %v314_v55, %v272_v20  ;;  %p629_p13 = scmp.lt.s32.totalorder %s369_s26, %s627_s4  ;;  %p630_p5 = scmp.lt.s32.totalorder %s628_s6, %s622_s8 }
  0x43   : > { %v231_v9 = vmax.f32 %v229_v5, %v230_v7  ;;  %v237_v10 = vrot.slane %v236_v8, 2  ;;  %vm281_vm1 = vcmp.eq.s32.totalorder %v272_v20, %v276_v24  ;;  %vm282_vm2 = vcmp.eq.s32.totalorder %v272_v20, %v280_v25  ;;  %p625_p3 = pneg %p624_p0 }
  0x44   : > { %v283_v30 = vsel %vm281_vm1, %v221_v0, 0.0  ;;  %v284_v34 = vsel %vm282_vm2, %v224_v1, 0.0  ;;  %v318_v1 = vrot.slane %v311_v59, %v317_v60  ;;  %p631_p12 = por %p630_p5, %p629_p13 }
  0x45   : > { %v232_v11 = vrot.slane %v231_v9, 1  ;;  %v238_v12 = vmax.f32 %v236_v8, %v237_v10  ;;  %v285_v35 = vsel %vm226_vm0, %v283_v30, 0.0  ;;  %v292_v38 = vsel %vm226_vm0, %v284_v34, 0.0 }
  0x46   : > { %v286_v41 = vrot.slane %v285_v35, 4  ;;  %v293_v44 = vrot.slane %v292_v38, 4  ;;  %v325_v7 = vrot.slane %v318_v1, %v317_v60  ;;  %p632_p6 = pnand %p631_p12, %p625_p3 }
  0x47   : > { %v233_v13 = vmax.f32 %v231_v9, %v232_v11  ;;  %v239_v14 = vrot.slane %v238_v12, 1 }
  0x48   : > { %v287_v47 = vadd.f32 %v286_v41, %v285_v35  ;;  %v294_v49 = vadd.f32 %v293_v44, %v292_v38  ;;  %vm326_vm4 = vcmp.ne.s32.totalorder %v325_v7, 0 }
  0x49   : > { %v240_v15 = vmax.f32 %v238_v12, %v239_v14  ;;  %vm327_vm5 = vmand %vm306_vm3, %vm326_vm4 }
  0x4a   : > { %v288_v50 = vrot.slane %v287_v47, 2  ;;  %v295_v53 = vrot.slane %v294_v49, 2 }
  0x4b   : > { %v243_v16 = vcombine.low %v233_v13, %v240_v15 }
  0x4c   : > { %v289_v54 = vadd.f32 %v288_v50, %v287_v47  ;;  %v296_v56 = vadd.f32 %v295_v53, %v294_v49 }
  0x4d   : > { %v245_v17 = vsub.f32 %v221_v0, %v243_v16 }
  0x4e   : > { %v290_v57 = vrot.slane %v289_v54, 1  ;;  %v297_v61 = vrot.slane %v296_v56, 1 }
  0x4f   : > { %v246_v19 = vmul.f32 1.442695, %v245_v17 }
  0x50   : > { %v291_v0 = vadd.f32 %v290_v57, %v289_v54  ;;  %v298_v5 = vadd.f32 %v297_v61, %v296_v56 }
  0x51   : > { %560 = vpow2.f32 %v246_v19 }
  0x5e   : > { %v561_v26 = vpop.eup %560 }
  0x5f   : > { %v249_v27 = vcombine.high %v561_v26, %v561_v26  ;;  %v251_v28 = vsel %vm226_vm0, %v561_v26, 0.0 }
  0x60   : > { %v252_v29 = vrot.slane %v251_v28, 4 }
  0x61   : > { %v258_v31 = vsel %vm226_vm0, %v249_v27, 0.0 }
  0x62   : > { %v253_v32 = vadd.f32 %v252_v29, %v251_v28  ;;  %v259_v33 = vrot.slane %v258_v31, 4 }
  0x64   : > { %v254_v36 = vrot.slane %v253_v32, 2  ;;  %v260_v37 = vadd.f32 %v259_v33, %v258_v31 }
  0x66   : > { %v255_v39 = vadd.f32 %v254_v36, %v253_v32  ;;  %v261_v40 = vrot.slane %v260_v37, 2 }
  0x68   : > { %v256_v42 = vrot.slane %v255_v39, 1  ;;  %v262_v43 = vadd.f32 %v261_v40, %v260_v37 }
  0x6a   : > { %v257_v45 = vadd.f32 %v256_v42, %v255_v39  ;;  %v263_v46 = vrot.slane %v262_v43, 1 }
  0x6c   : > { %v264_v48 = vadd.f32 %v263_v46, %v262_v43  ;;  %562 = vlog2.f32 %v257_v45 }
  0x6e   : > { %564 = vlog2.f32 %v264_v48 }
  0x79   : > { %v563_v62 = vpop.eup %562 }
  0x7a   : > { %v266_v63 = vmul.f32 0.6931472, %v563_v62 }
  0x7b   : > { %v565_v2 = vpop.eup %564 }
  0x7c   : > { %v268_v3 = vmul.f32 0.6931472, %v565_v2  ;;  %v269_v4 = vadd.f32 %v266_v63, %v233_v13 }
  0x7e   : > { %v270_v6 = vadd.f32 %v268_v3, %v240_v15  ;;  %v328_v8 = vsub.f32 %v269_v4, %v291_v0 }
  0x80   : > { %v329_v9 = vsub.f32 %v270_v6, %v298_v5 }
  0x82   : > { %v332_v10 = vcombine.low %v328_v8, %v329_v9 }
  0x84   : > { %v339_v11 = vrot.slane %v332_v10, %v317_v60 }
  0x86   : > { %v346_v12 = vrot.slane %v339_v11, %v317_v60 }
  0x88   : > { %v348_v14 = vsel %vm327_vm5, %v346_v12, 0.0 }
  0x89   : > { %v350_v16 = vrot.slane %v348_v14, 1 }
  0x8b   : > { %v352_v17 = vadd.f32 %v350_v16, %v348_v14 }
  0x8d   : > { %353 = vst [vmem:[%s218_s21] sm:$0x1] %v352_v17 }
  0x8e   : > { %635 = shalt.err (!%p632_p6)
}
  0x8f   : > { %s636_s12 = scalar_lea.hbm %s366_s3, 16  ;;  %s640_s16 = scalar_lea.hbm %s901_s2, 32 }
  0x90   : > { %p637_p7 = scmp.ne.s32.totalorder %s366_s3, %s636_s12  ;;  %p641_p4 = scmp.lt.s32.totalorder %s366_s3, %s901_s2 }
  0x91   : > { %p642_p10 = scmp.lt.s32.totalorder %s640_s16, %s636_s12 }
  0x92   : > { %p638_p1 = pnand %p637_p7, %p779_p9 }
  0x93   : > { %p643_p8 = por %p642_p10, %p641_p4 }
  0x94   : > { %p639_p2 = pneg %p638_p1 }
  0x96   : > { %p644_p0 = pnand %p643_p8, %p639_p2 }
  0x98   : > { %647 = shalt.err (!%p644_p0)
}
  0x99   : > { %494 = dma.vmem_to_hbm [thread:$0]  (%p779_p9), %s369_s26, 16, %s366_s3, %s355_s7  }
  0x9a PF: > { %s380_s18 = sand.u32 1, %s686_s9   ;;  %p908_p3 = scmp.ge.s32.totalorder %s706_s14, 2 }
  0x9b   : > { %s381_s20 = scalar_lea.sflag [#allocation4], %s380_s18 }
  0x9c   : > { %p504_p13 = pnand %p908_p3, %p786_p11 }
  0x9e   : > { %p505_p5 = pneg %p504_p13 }
  0xa0   : > { %681 = dma.done.wait (%p505_p5), %s381_s20, 16  }
  0xa1   : > { %683 = vsyncadd (%p505_p5), %s381_s20, 4294967280  ;;  %s21_s14 = sadd.s32 1, %s706_s14   ;;  %s909_s9 = smov %s690_s10 }
  0xa2   : > { %p18_p12 = scmp.ge.s32.totalorder %s21_s14, 4   ;;  %s910_s10 = smov %s694_s11 }
  0xa3   : > { %s911_s11 = smov %s784_s23  ;;  %s912_s12 = smov %s702_s13 }
  0xa4   : > { %s913_s13 = smov %s915_s17  ;;  %20 = sbr.rel (!%p18_p12) target bundleno = 8 (0x8), region = 86 }
  0xa9   :  { %385 = vsyncpa [#allocation3], 1 }
  0xaa   :  { %387 = vsyncpa [#allocation3 + $0x1], 1 }
  0xab   :  { %388 = vsyncpa [#allocation6], 1 }
  0xac   :  { %390 = vsyncpa [#allocation6 + $0x1], 1 }
  0xad   :  { %391 = vsyncpa [#allocation4], 1 }
  0xae   :  { %393 = vsyncpa [#allocation4 + $0x1], 1 }

</bundles_post_ra>
